<compile_context>
chip_gen: v6e
topology: v6e:2x2x1
jax: 0.10.0
libtpu: 0.0.40
codegen_flags: <defaults>
</compile_context>

<pallas_src>
import jax
import jax.numpy as jnp
from jax.experimental import pallas as pl
from jax.experimental.pallas import tpu as pltpu


def _cdiv(a, b):
    return (a + b - 1) // b


def _round_up(n, m):
    return ((n + m - 1) // m) * m


F_PAD = 128  # lane-padded feature width used only inside VMEM / for weights


def ctrl_net_kernel(x_ref, p_ref, w_ref, out_ref, hpad_ref):
    # x_ref   : (TB, I)  f32  compact batch tile (I = 16)
    # p_ref   : (8, F)   f32  packed per-feature params (resident):
    #             row 0 = depthwise-conv scale, row 1 = conv bias,
    #             rows 2..4 = b1, b2, b3 (zero-padded), rows 5..7 unused
    # w_ref   : (3, F, F)     packed zero-padded weights, (in, out) layout:
    #             [0] = W1, [1] = W2, [2] = W3   (bf16 fast path or f32)
    # out_ref : (TB, O)  f32  compact output tile (O = 8)
    # hpad_ref: (TB, F)  f32  VMEM scratch used to zero-extend h to 128 lanes
    I = x_ref.shape[1]
    O = out_ref.shape[1]

    x = x_ref[...]                       # (TB, I) f32
    scale = p_ref[0:1, :I]
    b_in = p_ref[1:2, :I]
    b1 = p_ref[2:3, :]                   # full (1, F), zero beyond H
    b2 = p_ref[3:4, :]
    b3 = p_ref[4:5, :]                   # zero beyond O

    # Depthwise 1x1 conv (groups=I) == per-feature scale + bias, then ReLU.
    # Stays f32 on the VPU (v5e-friendly).
    h16 = jnp.maximum(x * scale + b_in, 0.0)          # (TB, I)

    # Zero-extend to the 128-lane MXU width inside VMEM only (padded lanes
    # stay exactly zero through the whole chain because the padded weight
    # columns/rows and padded biases are zero).
    hpad_ref[...] = jnp.zeros_like(hpad_ref)
    hpad_ref[:, :I] = h16

    mm = w_ref.dtype  # bf16 on the fast path, f32 otherwise
    h = jnp.maximum(
        jnp.dot(hpad_ref[...].astype(mm), w_ref[0],
                preferred_element_type=jnp.float32) + b1, 0.0)
    h = jnp.maximum(
        jnp.dot(h.astype(mm), w_ref[1],
                preferred_element_type=jnp.float32) + b2, 0.0)
    o = jnp.dot(h.astype(mm), w_ref[2],
                preferred_element_type=jnp.float32) + b3
    out_ref[...] = o[:, :O].astype(out_ref.dtype)


def pack_ctrl_net_params(params, *, use_bf16=True):
    """Pack CTRL_NET weights into two resident slabs. Call ONCE per weight set."""
    I, H = params["w1"].shape
    O = params["w3"].shape[1]
    F = F_PAD

    # One lane-dense slab for all per-feature params (single resident DMA).
    p = jnp.zeros((8, F), jnp.float32)
    p = p.at[0, :I].set(params["w_in"].reshape(-1))
    p = p.at[1, :I].set(params["b_in"].reshape(-1))
    p = p.at[2, :H].set(params["b1"].reshape(-1))
    p = p.at[3, :H].set(params["b2"].reshape(-1))
    p = p.at[4, :O].set(params["b3"].reshape(-1))

    # One packed, zero-padded weight slab (single resident DMA).
    w = jnp.zeros((3, F, F), jnp.float32)
    w = w.at[0, :I, :H].set(params["w1"])
    w = w.at[1, :H, :H].set(params["w2"])
    w = w.at[2, :H, :O].set(params["w3"])
    w = w.astype(jnp.bfloat16 if use_bf16 else jnp.float32)
    return p, w, O


def ctrl_net_forward(x, p, w, *, out_features, tb_target=2048):
    """x: (B, I) float32. p/w: packed slabs from pack_ctrl_net_params.
    Returns (B, out_features) f32."""
    B, I = x.shape
    F = p.shape[1]
    O = out_features

    # Batch tile: aim for ~tb_target rows/step while minimising round-up waste.
    steps = max(1, _cdiv(B, tb_target))
    TB = _round_up(_cdiv(B, steps), 8)
    B_pad = _round_up(B, TB)

    x = x.astype(jnp.float32)
    if B_pad != B:
        # Padded rows produce garbage (relu(b_in) chain) but are sliced off.
        x = jnp.pad(x, ((0, B_pad - B), (0, 0)))

    grid = (B_pad // TB,)
    out = pl.pallas_call(
        ctrl_net_kernel,
        out_shape=jax.ShapeDtypeStruct((B_pad, O), jnp.float32),
        grid_spec=pltpu.PrefetchScalarGridSpec(
            num_scalar_prefetch=0,
            grid=grid,
            in_specs=[
                # Compact batch tile; last dim == full array dim (legal).
                pl.BlockSpec((TB, I), lambda i: (i, 0)),
                # Resident packed params / weights (constant index_map).
                pl.BlockSpec((8, F), lambda i: (0, 0)),
                pl.BlockSpec((3, F, F), lambda i: (0, 0, 0)),
            ],
            # Compact output tile; last dim == full array dim (legal).
            out_specs=pl.BlockSpec((TB, O), lambda i: (i, 0)),
            scratch_shapes=[pltpu.VMEM((TB, F), jnp.float32)],
        ),
        compiler_params=pltpu.CompilerParams(
            dimension_semantics=("parallel",),
        ),
    )(x, p, w)

    if B_pad != B:
        out = out[:B]
    return out


def init_params(key, I, O):
    """Deterministic synthetic parameters matching CTRL_NET((I, O)) shapes."""
    H = int(I ** 0.5)
    ks = jax.random.split(key, 8)
    return {
        # Conv1d(I, I, 1, groups=I): weight (I,1,1) -> per-feature scale (1, I)
        "w_in": jax.random.normal(ks[0], (1, I), jnp.float32) * 0.5,
        "b_in": jax.random.normal(ks[1], (1, I), jnp.float32) * 0.1,
        # Linear(I, H): torch weight (H, I) stored transposed as (I, H)
        "w1": jax.random.normal(ks[2], (I, H), jnp.float32) * (1.0 / I ** 0.5),
        "b1": jax.random.normal(ks[3], (1, H), jnp.float32) * 0.1,
        # Linear(H, H)
        "w2": jax.random.normal(ks[4], (H, H), jnp.float32) * (1.0 / H ** 0.5),
        "b2": jax.random.normal(ks[5], (1, H), jnp.float32) * 0.1,
        # Linear(H, O)
        "w3": jax.random.normal(ks[6], (H, O), jnp.float32) * (1.0 / H ** 0.5),
        "b3": jax.random.normal(ks[7], (1, O), jnp.float32) * 0.1,
    }


def reference_forward(x, p):
    """Plain-JAX reference mirroring the torch forward."""
    h = jnp.maximum(x * p["w_in"] + p["b_in"], 0.0)
    h = jnp.maximum(h @ p["w1"] + p["b1"], 0.0)
    h = jnp.maximum(h @ p["w2"] + p["b2"], 0.0)
    return h @ p["w3"] + p["b3"]


if __name__ == "__main__":
    # CTRL_NET(IO=(16, 8)): I=16, H=sqrt(16)=4, O=8, batch B=2.
    B, I, O = 2, 16, 8
    key = jax.random.PRNGKey(0)
    kx, kp = jax.random.split(key)
    x = jax.random.normal(kx, (B, I), jnp.float32)
    params = init_params(kp, I, O)
    ref = reference_forward(x, params)

    # Pack once (hoisted out of the per-call path); slabs become jit constants.
    p32, w32, o32 = pack_ctrl_net_params(params, use_bf16=False)
    pbf, wbf, obf = pack_ctrl_net_params(params, use_bf16=True)

    fwd_f32 = jax.jit(lambda xx: ctrl_net_forward(xx, p32, w32, out_features=o32))
    fwd_bf16 = jax.jit(lambda xx: ctrl_net_forward(xx, pbf, wbf, out_features=obf))

    # f32-matmul path: should match the reference tightly.
    out_f32 = jax.block_until_ready(fwd_f32(x))
    assert out_f32.shape == (B, O)
    assert jnp.allclose(out_f32, ref, atol=1e-5, rtol=1e-5), "f32 mismatch"

    # bf16-weight MXU fast path (all generations): looser tolerance.
    out_bf16 = jax.block_until_ready(fwd_bf16(x))
    assert out_bf16.shape == (B, O)
    assert jnp.allclose(out_bf16, ref, atol=5e-2, rtol=5e-2), "bf16 mismatch"

    print("KERNEL_OK")
</pallas_src>

<mosaic_0001>
module attributes {stable_mosaic.version = 11 : i64} {
  func.func @ctrl_net_kernel(%arg0: i32, %arg1: memref<8x16xf32, #tpu.memory_space<vmem>>, %arg2: memref<8x128xf32, #tpu.memory_space<vmem>>, %arg3: memref<3x128x128xf32, #tpu.memory_space<vmem>>, %arg4: memref<8x8xf32, #tpu.memory_space<vmem>>, %arg5: memref<8x128xf32, #tpu.memory_space<vmem>>) attributes {dimension_semantics = [#tpu.dimension_semantics<parallel>], iteration_bounds = array<i64: 1>, scalar_prefetch = 0 : i64, scratch_operands = 1 : i64, tpu.core_type = #tpu.core_type<tc>, window_params = [{transform_indices = @transform_0, window_bounds = array<i64: 8, 16>}, {pipeline_mode = #tpu.pipeline_mode<synchronous>, transform_indices = @transform_1, window_bounds = array<i64: 8, 128>}, {pipeline_mode = #tpu.pipeline_mode<synchronous>, transform_indices = @transform_2, window_bounds = array<i64: 3, 128, 128>}, {transform_indices = @transform_3, window_bounds = array<i64: 8, 8>}]} {
    %c0 = arith.constant 0 : index
    %c0_0 = arith.constant 0 : index
    %0 = vector.load %arg1[%c0, %c0_0] : memref<8x16xf32, #tpu.memory_space<vmem>>, vector<8x16xf32>
    %c0_1 = arith.constant 0 : index
    %c0_2 = arith.constant 0 : index
    %1 = vector.load %arg2[%c0_1, %c0_2] : memref<8x128xf32, #tpu.memory_space<vmem>>, vector<1x16xf32>
    %c1 = arith.constant 1 : index
    %c0_3 = arith.constant 0 : index
    %2 = vector.load %arg2[%c1, %c0_3] : memref<8x128xf32, #tpu.memory_space<vmem>>, vector<1x16xf32>
    %c2 = arith.constant 2 : index
    %c0_4 = arith.constant 0 : index
    %3 = vector.load %arg2[%c2, %c0_4] : memref<8x128xf32, #tpu.memory_space<vmem>>, vector<1x128xf32>
    %c3 = arith.constant 3 : index
    %c0_5 = arith.constant 0 : index
    %4 = vector.load %arg2[%c3, %c0_5] : memref<8x128xf32, #tpu.memory_space<vmem>>, vector<1x128xf32>
    %c4 = arith.constant 4 : index
    %c0_6 = arith.constant 0 : index
    %5 = vector.load %arg2[%c4, %c0_6] : memref<8x128xf32, #tpu.memory_space<vmem>>, vector<1x128xf32>
    %6 = vector.broadcast %1 : vector<1x16xf32> to vector<8x16xf32>
    %7 = arith.mulf %0, %6 : vector<8x16xf32>
    %8 = vector.broadcast %2 : vector<1x16xf32> to vector<8x16xf32>
    %9 = arith.addf %7, %8 : vector<8x16xf32>
    %cst = arith.constant 0.000000e+00 : f32
    %10 = vector.broadcast %cst : f32 to vector<8x16xf32>
    %11 = arith.maximumf %9, %10 : vector<8x16xf32>
    %cst_7 = arith.constant 0.000000e+00 : f32
    %12 = vector.broadcast %cst_7 : f32 to vector<8x128xf32>
    %c0_8 = arith.constant 0 : index
    %c0_9 = arith.constant 0 : index
    %13 = vector.load %arg5[%c0_8, %c0_9] : memref<8x128xf32, #tpu.memory_space<vmem>>, vector<8x128xf32>
    tpu.vector_store %arg5[%c0_8, %c0_9], %12 {strides = array<i32>} : memref<8x128xf32, #tpu.memory_space<vmem>>, vector<8x128xf32>,
    %c0_10 = arith.constant 0 : index
    %c0_11 = arith.constant 0 : index
    %14 = vector.load %arg5[%c0_10, %c0_11] : memref<8x128xf32, #tpu.memory_space<vmem>>, vector<8x16xf32>
    tpu.vector_store %arg5[%c0_10, %c0_11], %11 {strides = array<i32>} : memref<8x128xf32, #tpu.memory_space<vmem>>, vector<8x16xf32>,
    %c0_12 = arith.constant 0 : index
    %c0_13 = arith.constant 0 : index
    %15 = vector.load %arg5[%c0_12, %c0_13] : memref<8x128xf32, #tpu.memory_space<vmem>>, vector<8x128xf32>
    %c0_14 = arith.constant 0 : index
    %c0_15 = arith.constant 0 : index
    %c0_16 = arith.constant 0 : index
    %16 = vector.load %arg3[%c0_14, %c0_15, %c0_16] : memref<3x128x128xf32, #tpu.memory_space<vmem>>, vector<1x128x128xf32>
    %17 = vector.shape_cast %16 : vector<1x128x128xf32> to vector<128x128xf32>
    %cst_17 = arith.constant dense<0.000000e+00> : vector<8x128xf32>
    %18 = tpu.matmul %15, %17, %cst_17 {dimension_numbers = #tpu.dot_dimension_numbers<[1], [0], [0], [1], [0, 0, 1, 1], [], []>} : vector<8x128xf32>, vector<128x128xf32>, vector<8x128xf32> -> vector<8x128xf32>
    %19 = vector.broadcast %3 : vector<1x128xf32> to vector<8x128xf32>
    %20 = arith.addf %18, %19 : vector<8x128xf32>
    %cst_18 = arith.constant 0.000000e+00 : f32
    %21 = vector.broadcast %cst_18 : f32 to vector<8x128xf32>
    %22 = arith.maximumf %20, %21 : vector<8x128xf32>
    %c1_19 = arith.constant 1 : index
    %c0_20 = arith.constant 0 : index
    %c0_21 = arith.constant 0 : index
    %23 = vector.load %arg3[%c1_19, %c0_20, %c0_21] : memref<3x128x128xf32, #tpu.memory_space<vmem>>, vector<1x128x128xf32>
    %24 = vector.shape_cast %23 : vector<1x128x128xf32> to vector<128x128xf32>
    %cst_22 = arith.constant dense<0.000000e+00> : vector<8x128xf32>
    %25 = tpu.matmul %22, %24, %cst_22 {dimension_numbers = #tpu.dot_dimension_numbers<[1], [0], [0], [1], [0, 0, 1, 1], [], []>} : vector<8x128xf32>, vector<128x128xf32>, vector<8x128xf32> -> vector<8x128xf32>
    %26 = vector.broadcast %4 : vector<1x128xf32> to vector<8x128xf32>
    %27 = arith.addf %25, %26 : vector<8x128xf32>
    %cst_23 = arith.constant 0.000000e+00 : f32
    %28 = vector.broadcast %cst_23 : f32 to vector<8x128xf32>
    %29 = arith.maximumf %27, %28 : vector<8x128xf32>
    %c2_24 = arith.constant 2 : index
    %c0_25 = arith.constant 0 : index
    %c0_26 = arith.constant 0 : index
    %30 = vector.load %arg3[%c2_24, %c0_25, %c0_26] : memref<3x128x128xf32, #tpu.memory_space<vmem>>, vector<1x128x128xf32>
    %31 = vector.shape_cast %30 : vector<1x128x128xf32> to vector<128x128xf32>
    %cst_27 = arith.constant dense<0.000000e+00> : vector<8x128xf32>
    %32 = tpu.matmul %29, %31, %cst_27 {dimension_numbers = #tpu.dot_dimension_numbers<[1], [0], [0], [1], [0, 0, 1, 1], [], []>} : vector<8x128xf32>, vector<128x128xf32>, vector<8x128xf32> -> vector<8x128xf32>
    %33 = vector.broadcast %5 : vector<1x128xf32> to vector<8x128xf32>
    %34 = arith.addf %32, %33 : vector<8x128xf32>
    %35 = vector.extract_strided_slice %34 {offsets = [0, 0], sizes = [8, 8], strides = [1, 1]} : vector<8x128xf32> to vector<8x8xf32>
    %c0_28 = arith.constant 0 : index
    %c0_29 = arith.constant 0 : index
    %36 = vector.load %arg4[%c0_28, %c0_29] : memref<8x8xf32, #tpu.memory_space<vmem>>, vector<8x8xf32>
    tpu.vector_store %arg4[%c0_28, %c0_29], %35 {strides = array<i32>} : memref<8x8xf32, #tpu.memory_space<vmem>>, vector<8x8xf32>,
    return
  }
  func.func @transform_0(%arg0: i32) -> (i32, i32) {
    %c0_i32 = arith.constant 0 : i32
    %c0_i32_0 = arith.constant 0 : i32
    return %arg0, %c0_i32 : i32, i32
  }
  func.func @transform_1(%arg0: i32) -> (i32, i32) {
    %c0_i32 = arith.constant 0 : i32
    %c0_i32_0 = arith.constant 0 : i32
    %c0_i32_1 = arith.constant 0 : i32
    return %c0_i32, %c0_i32_0 : i32, i32
  }
  func.func @transform_2(%arg0: i32) -> (i32, i32, i32) {
    %c0_i32 = arith.constant 0 : i32
    %c0_i32_0 = arith.constant 0 : i32
    %c0_i32_1 = arith.constant 0 : i32
    %c0_i32_2 = arith.constant 0 : i32
    return %c0_i32, %c0_i32_0, %c0_i32_1 : i32, i32, i32
  }
  func.func @transform_3(%arg0: i32) -> (i32, i32) {
    %c0_i32 = arith.constant 0 : i32
    %c0_i32_0 = arith.constant 0 : i32
    return %arg0, %c0_i32 : i32, i32
  }
}

</mosaic_0001>

<bundles_post_ra>
// kernel: _lambda_.1
= control target key start
LH: loop header
LB: loop body
LE: loop exit
PB: predicated region body
PF: predicated region fallthrough
CT: control target
= control target key end

     0   :  { %8 = vsyncpa [#allocation4], 0  ;;  %s518_s12 = smov [#allocation3]   ;;  %s622_s0 = inlined_call_operand.vmem [shape: f32[8,16], index: 0, kind: input, shape index: {}]   ;;  %s623_s1 = inlined_call_operand.vmem [shape: f32[8,128], index: 1, kind: input, shape index: {}]   ;;  %s624_s2 = inlined_call_operand.hbm [shape: f32[3,128,128], index: 2, kind: input, shape index: {}]   ;;  %s625_s3 = inlined_call_operand.vmem [shape: f32[8,8], index: 3, kind: output, shape index: {}]  }
   0x1   :  { %s18_s13 = sshll.u32 %s518_s12, 4  ;;  %s19_s13 = int_to_ptr.vmem [resolvable:$true] %s18_s13 }
   0x2   :  { %s504_s14 = scalar_lea.vmem %s19_s13, 6144  ;;  %p509_p1 = scmp.lt.s32.totalorder %s19_s13, %s19_s13 }
   0x3   :  { %p505_p0 = scmp.ne.s32.totalorder %s19_s13, %s504_s14  ;;  %p510_p2 = scmp.lt.s32.totalorder %s504_s14, %s504_s14 }
   0x5   :  { %p511_p3 = por %p510_p2, %p509_p1 }
   0x7   :  { %p512_p4 = pnand %p511_p3, %p505_p0 }
   0x9   :  { %515 = shalt.err (!%p512_p4)
}
   0xa   :  { %s519_s15 = smov 128   ;;  %s520_s16 = smov 8  }
   0xb   :  { %24 = dma.hbm_to_vmem [thread:$0]  %s624_s2, 6144, %s19_s13, [#allocation4], %s519_s15, %s519_s15, %s520_s16  }
   0xc   :  { %516 = dma.done.wait [#allocation4], 6144  }
   0xd   :  { %517 = vsyncadd [#allocation4], 4294961152  ;;  %v521_v0 = vmov 0.0   ;;  %vm522_vm0 = vmmov 0   ;;  %v64_v1 = vld [vmem:[#allocation3 + $0x78] sm:$0xff]  ;;  %v63_v2 = vld [vmem:[#allocation3 + $0x70] sm:$0xff] }
   0xe   :  { %386 = vmatprep.subr.mxu0 %v521_v0  ;;  %45 = vst [vmem:[#allocation2] sm:$0xff] %v521_v0  ;;  %418 = vmatprep.mubr.msk.f32.mxu0 %vm522_vm0, %v521_v0  ;;  %v62_v3 = vld [vmem:[#allocation3 + $0x68] sm:$0xff]  ;;  %v61_v4 = vld [vmem:[#allocation3 + $0x60] sm:$0xff]  ;;  %v60_v5 = vld [vmem:[#allocation3 + $0x58] sm:$0xff]  ;;  %vm46_vm1 = vcmask 130048   ;;  %vm323_vm2 = vcmask 64512  }
   0xf   :  { %421 = vmatprep.subr.mxu1 %v521_v0  ;;  %453 = vmatprep.mubr.msk.f32.mxu1 %vm522_vm0, %v521_v0  ;;  %v28_v6 = vld [vmem:[%s622_s0] sm:$0xff]  ;;  %v155_v11 = vld [vmem:[#allocation3 + $0xf0] sm:$0xff]  ;;  %v154_v14 = vld [vmem:[#allocation3 + $0xe8] sm:$0xff] }
  0x10   :  { %387 = vmatpush3.msra.mxu0 %v64_v1  ;;  %v330_v7 = vld [vmem:[%s623_s1] ss:$0 sm:$0xff]  ;;  %v331_v8 = vld [vmem:[%s623_s1 + $0x1] ss:$0 sm:$0xff]  ;;  %v59_v12 = vld [vmem:[#allocation3 + $0x50] sm:$0xff] }
  0x11   :  { %388 = vmatprep.subr.mxu0 %v521_v0  ;;  %v38_v9 = vmul.f32 %v330_v7, %v28_v6  ;;  %v156_v10 = vld [vmem:[#allocation3 + $0xf8] sm:$0xff]  ;;  %v58_v15 = vld [vmem:[#allocation3 + $0x48] sm:$0xff]  ;;  %v153_v17 = vld [vmem:[#allocation3 + $0xe0] sm:$0xff] }
  0x12   :  { %389 = vmatpush3.msra.mxu0 %v63_v2  ;;  %422 = vmatpush3.msra.mxu1 %v156_v10  ;;  %v57_v18 = vld [vmem:[#allocation3 + $0x40] sm:$0xff]  ;;  %v152_v19 = vld [vmem:[#allocation3 + $0xd8] sm:$0xff]  ;;  %v151_v21 = vld [vmem:[#allocation3 + $0xd0] sm:$0xff] }
  0x13   :  { %390 = vmatprep.subr.mxu0 %v521_v0  ;;  %v43_v13 = vadd.f32 %v331_v8, %v38_v9  ;;  %423 = vmatprep.subr.mxu1 %v521_v0  ;;  %v56_v20 = vld [vmem:[#allocation3 + $0x38] sm:$0xff]  ;;  %v55_v22 = vld [vmem:[#allocation3 + $0x30] sm:$0xff]  ;;  %v150_v23 = vld [vmem:[#allocation3 + $0xc8] sm:$0xff] }
  0x14   :  { %391 = vmatpush3.msra.mxu0 %v62_v3  ;;  %424 = vmatpush3.msra.mxu1 %v155_v11  ;;  %v54_v24 = vld [vmem:[#allocation3 + $0x28] sm:$0xff]  ;;  %v149_v25 = vld [vmem:[#allocation3 + $0xc0] sm:$0xff]  ;;  %v148_v27 = vld [vmem:[#allocation3 + $0xb8] sm:$0xff] }
  0x15   :  { %392 = vmatprep.subr.mxu0 %v521_v0  ;;  %v44_v16 = vmax.f32 %v43_v13, 0.0  ;;  %425 = vmatprep.subr.mxu1 %v521_v0  ;;  %v53_v26 = vld [vmem:[#allocation3 + $0x20] sm:$0xff]  ;;  %v52_v28 = vld [vmem:[#allocation3 + $0x18] sm:$0xff]  ;;  %v147_v29 = vld [vmem:[#allocation3 + $0xb0] sm:$0xff] }
  0x16   :  { %393 = vmatpush3.msra.mxu0 %v61_v4  ;;  %426 = vmatpush3.msra.mxu1 %v154_v14  ;;  %v51_v30 = vld [vmem:[#allocation3 + $0x10] sm:$0xff]  ;;  %v146_v31 = vld [vmem:[#allocation3 + $0xa8] sm:$0xff]  ;;  %v145_v33 = vld [vmem:[#allocation3 + $0xa0] sm:$0xff] }
  0x17   :  { %394 = vmatprep.subr.mxu0 %v521_v0  ;;  %47 = vst.msk [vmem:[#allocation2] sm:$0xff] %vm46_vm1, %v44_v16  ;;  %427 = vmatprep.subr.mxu1 %v521_v0  ;;  %v50_v32 = vld [vmem:[#allocation3 + $0x8] sm:$0xff]  ;;  %v49_v34 = vld [vmem:[#allocation3] sm:$0xff]  ;;  %v144_v35 = vld [vmem:[#allocation3 + $0x98] sm:$0xff] }
  0x18   :  { %395 = vmatpush3.msra.mxu0 %v60_v5  ;;  %428 = vmatpush3.msra.mxu1 %v153_v17  ;;  %v143_v37 = vld [vmem:[#allocation3 + $0x90] sm:$0xff]  ;;  %v142_v38 = vld [vmem:[#allocation3 + $0x88] sm:$0xff]  ;;  %v141_v39 = vld [vmem:[#allocation3 + $0x80] sm:$0xff] }
  0x19   :  { %396 = vmatprep.subr.mxu0 %v521_v0  ;;  %429 = vmatprep.subr.mxu1 %v521_v0  ;;  %v248_v40 = vld [vmem:[#allocation3 + $0x178] sm:$0xff]  ;;  %v247_v41 = vld [vmem:[#allocation3 + $0x170] sm:$0xff]  ;;  %v246_v42 = vld [vmem:[#allocation3 + $0x168] sm:$0xff] }
  0x1a   :  { %397 = vmatpush3.msra.mxu0 %v59_v12  ;;  %430 = vmatpush3.msra.mxu1 %v152_v19  ;;  %v245_v43 = vld [vmem:[#allocation3 + $0x160] sm:$0xff]  ;;  %v244_v44 = vld [vmem:[#allocation3 + $0x158] sm:$0xff]  ;;  %v243_v45 = vld [vmem:[#allocation3 + $0x150] sm:$0xff] }
  0x1b   :  { %398 = vmatprep.subr.mxu0 %v521_v0  ;;  %431 = vmatprep.subr.mxu1 %v521_v0  ;;  %v242_v46 = vld [vmem:[#allocation3 + $0x148] sm:$0xff]  ;;  %v241_v47 = vld [vmem:[#allocation3 + $0x140] sm:$0xff]  ;;  %v240_v48 = vld [vmem:[#allocation3 + $0x138] sm:$0xff] }
  0x1c   :  { %399 = vmatpush3.msra.mxu0 %v58_v15  ;;  %432 = vmatpush3.msra.mxu1 %v151_v21  ;;  %v239_v49 = vld [vmem:[#allocation3 + $0x130] sm:$0xff]  ;;  %v238_v50 = vld [vmem:[#allocation3 + $0x128] sm:$0xff]  ;;  %v237_v51 = vld [vmem:[#allocation3 + $0x120] sm:$0xff] }
  0x1d   :  { %400 = vmatprep.subr.mxu0 %v521_v0  ;;  %433 = vmatprep.subr.mxu1 %v521_v0  ;;  %v236_v52 = vld [vmem:[#allocation3 + $0x118] sm:$0xff]  ;;  %v235_v58 = vld [vmem:[#allocation3 + $0x110] sm:$0xff]  ;;  %v234_v59 = vld [vmem:[#allocation3 + $0x108] sm:$0xff] }
  0x1e   :  { %401 = vmatpush3.msra.mxu0 %v57_v18  ;;  %434 = vmatpush3.msra.mxu1 %v150_v23  ;;  %v48_v36 = vld [vmem:[#allocation2] sm:$0xff]  ;;  %v233_v60 = vld [vmem:[#allocation3 + $0x100] sm:$0xff] }
  0x1f   :  { %402 = vmatprep.subr.mxu0 %v521_v0  ;;  %435 = vmatprep.subr.mxu1 %v521_v0  ;;  %v332_v53 = vld [vmem:[%s623_s1 + $0x2] ss:$0 sm:$0xff]  ;;  %v333_v61 = vld [vmem:[%s623_s1 + $0x3] ss:$0 sm:$0xff]  ;;  %v334_v3 = vld [vmem:[%s623_s1 + $0x4] ss:$0 sm:$0xff] }
  0x20   :  { %403 = vmatpush3.msra.mxu0 %v56_v20  ;;  %436 = vmatpush3.msra.mxu1 %v149_v25 }
  0x21   :  { %404 = vmatprep.subr.mxu0 %v521_v0  ;;  %437 = vmatprep.subr.mxu1 %v521_v0 }
  0x22   :  { %405 = vmatpush3.msra.mxu0 %v55_v22  ;;  %438 = vmatpush3.msra.mxu1 %v148_v27 }
  0x23   :  { %406 = vmatprep.subr.mxu0 %v521_v0  ;;  %439 = vmatprep.subr.mxu1 %v521_v0 }
  0x24   :  { %407 = vmatpush3.msra.mxu0 %v54_v24  ;;  %440 = vmatpush3.msra.mxu1 %v147_v29 }
  0x25   :  { %408 = vmatprep.subr.mxu0 %v521_v0  ;;  %441 = vmatprep.subr.mxu1 %v521_v0 }
  0x26   :  { %409 = vmatpush3.msra.mxu0 %v53_v26  ;;  %442 = vmatpush3.msra.mxu1 %v146_v31 }
  0x27   :  { %410 = vmatprep.subr.mxu0 %v521_v0  ;;  %443 = vmatprep.subr.mxu1 %v521_v0 }
  0x28   :  { %411 = vmatpush3.msra.mxu0 %v52_v28  ;;  %444 = vmatpush3.msra.mxu1 %v145_v33 }
  0x29   :  { %412 = vmatprep.subr.mxu0 %v521_v0  ;;  %445 = vmatprep.subr.mxu1 %v521_v0 }
  0x2a   :  { %413 = vmatpush3.msra.mxu0 %v51_v30  ;;  %446 = vmatpush3.msra.mxu1 %v144_v35 }
  0x2b   :  { %414 = vmatprep.subr.mxu0 %v521_v0  ;;  %447 = vmatprep.subr.mxu1 %v521_v0 }
  0x2c   :  { %415 = vmatpush3.msra.mxu0 %v50_v32  ;;  %448 = vmatpush3.msra.mxu1 %v143_v37 }
  0x2d   :  { %416 = vmatprep.subr.mxu0 %v521_v0  ;;  %449 = vmatprep.subr.mxu1 %v521_v0 }
  0x2e   :  { %417 = vmatpush3.msra.mxu0 %v49_v34  ;;  %450 = vmatpush3.msra.mxu1 %v142_v38 }
  0x2f   :  { %419 = vmatmul.mubr.f32.vlgmr.msra.gmra.mxu0 %v48_v36  ;;  %456 = vmatprep.subr.mxu0 %v521_v0 }
  0x30   :  { %488 = vmatprep.mubr.msk.f32.mxu0 %vm522_vm0, %v521_v0  ;;  %451 = vmatprep.subr.mxu1 %v521_v0 }
  0x31   :  { %452 = vmatpush3.msra.mxu1 %v141_v39  ;;  %457 = vmatpush3.msra.mxu0 %v248_v40 }
  0x32   :  { %458 = vmatprep.subr.mxu0 %v521_v0 }
  0x33   :  { %459 = vmatpush3.msra.mxu0 %v247_v41 }
  0x34   :  { %460 = vmatprep.subr.mxu0 %v521_v0 }
  0x35   :  { %461 = vmatpush3.msra.mxu0 %v246_v42 }
  0x36   :  { %462 = vmatprep.subr.mxu0 %v521_v0 }
  0x37   :  { %463 = vmatpush3.msra.mxu0 %v245_v43 }
  0x38   :  { %464 = vmatprep.subr.mxu0 %v521_v0 }
  0x39   :  { %465 = vmatpush3.msra.mxu0 %v244_v44 }
  0x3a   :  { %466 = vmatprep.subr.mxu0 %v521_v0 }
  0x3b   :  { %467 = vmatpush3.msra.mxu0 %v243_v45 }
  0x3c   :  { %468 = vmatprep.subr.mxu0 %v521_v0 }
  0x3d   :  { %469 = vmatpush3.msra.mxu0 %v242_v46 }
  0x3e   :  { %470 = vmatprep.subr.mxu0 %v521_v0 }
  0x3f   :  { %471 = vmatpush3.msra.mxu0 %v241_v47 }
  0x40   :  { %472 = vmatprep.subr.mxu0 %v521_v0 }
  0x41   :  { %473 = vmatpush3.msra.mxu0 %v240_v48 }
  0x42   :  { %474 = vmatprep.subr.mxu0 %v521_v0 }
  0x43   :  { %475 = vmatpush3.msra.mxu0 %v239_v49 }
  0x44   :  { %476 = vmatprep.subr.mxu0 %v521_v0 }
  0x45   :  { %477 = vmatpush3.msra.mxu0 %v238_v50 }
  0x46   :  { %478 = vmatprep.subr.mxu0 %v521_v0 }
  0x47   :  { %479 = vmatpush3.msra.mxu0 %v237_v51 }
  0x48   :  { %480 = vmatprep.subr.mxu0 %v521_v0 }
  0x49   :  { %481 = vmatpush3.msra.mxu0 %v236_v52 }
  0x4a   :  { %482 = vmatprep.subr.mxu0 %v521_v0 }
  0x4b   :  { %483 = vmatpush3.msra.mxu0 %v235_v58 }
  0x4c   :  { %484 = vmatprep.subr.mxu0 %v521_v0 }
  0x4d   :  { %485 = vmatpush3.msra.mxu0 %v234_v59 }
  0x4e   :  { %486 = vmatprep.subr.mxu0 %v521_v0 }
  0x4f   :  { %487 = vmatpush3.msra.mxu0 %v233_v60 }
  0xef   :  { %v135_v54 = vpop.f32.mrf.mxu0 }
  0xf0   :  { %v136_v55 = vadd.f32 %v332_v53, %v135_v54 }
  0xf1   :  { %v420_v56 = vpop.f32.mrf.mxu0 }
  0xf2   :  { %v139_v57 = vmax.f32 %v136_v55, 0.0 }
  0xf4   :  { %454 = vmatmul.mubr.f32.vlgmr.msra.gmra.mxu1 %v139_v57 }
 0x1b4   :  { %v227_v62 = vpop.f32.mrf.mxu1 }
 0x1b5   :  { %v228_v63 = vadd.f32 %v333_v61, %v227_v62 }
 0x1b6   :  { %v455_v1 = vpop.f32.mrf.mxu1 }
 0x1b7   :  { %v231_v2 = vmax.f32 %v228_v63, 0.0 }
 0x1b9   :  { %489 = vmatmul.mubr.f32.vlgmr.msra.gmra.mxu0 %v231_v2 }
 0x279   :  { %v319_v4 = vpop.f32.mrf.mxu0 }
 0x27a   :  { %v320_v5 = vadd.f32 %v334_v3, %v319_v4 }
 0x27b   :  { %v490_v6 = vpop.f32.mrf.mxu0 }
 0x27c   :  { %324 = vst.msk [vmem:[%s625_s3] sm:$0xff] %vm323_vm2, %v320_v5 }
 0x27d   :  { %329 = vsyncpa [#allocation4], 1 }

</bundles_post_ra>
